<compile_context>
chip_gen: v7x
topology: tpu7x:2x2x1
jax: 0.10.0
libtpu: 0.0.40
codegen_flags: <defaults>
</compile_context>

<pallas_src>
import functools

import jax
import jax.numpy as jnp
from jax.experimental import pallas as pl
from jax.experimental.pallas import tpu as pltpu

INPUT_SIZE = 26
HIDDEN_SIZES = [100, 100, 50, 100, 100]
OUTPUT_SIZE = 2
NUM_HIDDEN = len(HIDDEN_SIZES)
IN_PAD = 32        # input feature dim padded only to 32 lanes
PAD = 128          # hidden feature dims padded to the full 128-lane width
BN_EPS = 1e-5


def mlp_kernel(x_ref, w0_ref, wh_ref, bh_ref, wo_ref, bo_ref, o_ref):
    """One batch tile of the padded MLP.

    x_ref : (TB, 32)        bf16  padded input activations (batch tile)
    w0_ref: (32, 128)       bf16  padded layer-0 weight, BN scale pre-folded
    wh_ref: (4, 128, 128)   bf16  stacked padded weights for hidden layers 1..4
    bh_ref: (5, 1, 128)     f32   stacked fused biases (b*scale + shift) for all 5 layers
    wo_ref: (128, 2)        bf16  output weight (narrow)
    bo_ref: (1, 2)          f32   output bias (narrow)
    o_ref : (TB, 2)         f32   softmax probabilities
    """
    # Layer 0: K = 32 (26-wide input padded only to 32 lanes).
    h = jnp.dot(x_ref[...], w0_ref[...], preferred_element_type=jnp.float32)
    # Linear bias + folded BatchNorm (eval) collapsed to one add; Dropout = identity.
    h = jnp.maximum(h + bh_ref[0], 0.0)

    # Hidden layers 1..4 (static unroll).
    for i in range(1, NUM_HIDDEN):
        h = jnp.dot(h.astype(jnp.bfloat16), wh_ref[i - 1],
                    preferred_element_type=jnp.float32)
        h = jnp.maximum(h + bh_ref[i], 0.0)

    # Output layer: narrow (128 -> 2) matmul, then exact 2-class softmax over dim=1.
    logits = jnp.dot(h.astype(jnp.bfloat16), wo_ref[...],
                     preferred_element_type=jnp.float32) + bo_ref[...]
    m = jnp.max(logits, axis=1, keepdims=True)
    e = jnp.exp(logits - m)
    s = jnp.sum(e, axis=1, keepdims=True)
    o_ref[...] = e / s   # exact normalization: rows sum to 1 within float rounding

    # TODO(synk): training-mode stochastic dropout / batch-statistics BatchNorm are not
    # implemented (inference-only semantics).


@functools.partial(jax.jit, static_argnames=("tb",))
def run_mlp(x_pad, w0, wh, bh, wo, bo, *, tb):
    Bp = x_pad.shape[0]
    grid = (Bp // tb,)
    return pl.pallas_call(
        mlp_kernel,
        out_shape=jax.ShapeDtypeStruct((Bp, OUTPUT_SIZE), jnp.float32),
        grid=grid,
        in_specs=[
            pl.BlockSpec((tb, IN_PAD), lambda i: (i, 0)),                   # streamed bf16 activations
            pl.BlockSpec((IN_PAD, PAD), lambda i: (0, 0)),                  # resident layer-0 weight
            pl.BlockSpec((NUM_HIDDEN - 1, PAD, PAD), lambda i: (0, 0, 0)),  # resident hidden weights
            pl.BlockSpec((NUM_HIDDEN, 1, PAD), lambda i: (0, 0, 0)),        # resident fused biases
            pl.BlockSpec((PAD, OUTPUT_SIZE), lambda i: (0, 0)),             # resident output weight
            pl.BlockSpec((1, OUTPUT_SIZE), lambda i: (0, 0)),               # resident output bias
        ],
        out_specs=pl.BlockSpec((tb, OUTPUT_SIZE), lambda i: (i, 0)),        # narrow f32 output
        compiler_params=pltpu.CompilerParams(
            dimension_semantics=("parallel",),   # megacore sharding where available
            vmem_limit_bytes=32 << 20,
        ),
    )(x_pad, w0, wh, bh, wo, bo)


def _pick_tile(b8):
    """Pick (tb, Bp): single tile for small batches, otherwise the tile in
    {1024, 512, 256, 128} that minimizes padded rows (ties -> larger tile)."""
    if b8 <= 512:
        return b8, b8
    best_tb, best_bp = None, None
    for tb in (1024, 512, 256, 128):
        bp = -(-b8 // tb) * tb
        if best_bp is None or bp < best_bp:
            best_tb, best_bp = tb, bp
    return best_tb, best_bp


def fc_forward(x, w0, wh, bh, wo, bo):
    """Pad input (26 -> 32 lanes, bf16), choose a batch tile, run, slice."""
    batch = x.shape[0]
    b8 = ((batch + 7) // 8) * 8                     # sublane-align
    tb, Bp = _pick_tile(b8)
    x_pad = jnp.zeros((Bp, IN_PAD), jnp.bfloat16).at[:batch, :INPUT_SIZE].set(
        x.astype(jnp.bfloat16))
    out = run_mlp(x_pad, w0, wh, bh, wo, bo, tb=tb)
    return out[:batch]


def init_params(key):
    """nn.Linear-default init (U[-1/sqrt(fan_in), 1/sqrt(fan_in)]), BN folded into W/b.

    Returns padded kernel params (bf16 weights, f32 fused biases) and raw f32 params
    for a pure-JAX reference.
    """
    sizes = [INPUT_SIZE] + HIDDEN_SIZES
    # BatchNorm1d defaults (eval): gamma=1, beta=0, running_mean=0, running_var=1
    scale_val = (1.0 + BN_EPS) ** -0.5
    shift_val = 0.0

    w0 = jnp.zeros((IN_PAD, PAD), jnp.float32)
    wh = jnp.zeros((NUM_HIDDEN - 1, PAD, PAD), jnp.float32)
    bh = jnp.zeros((NUM_HIDDEN, 1, PAD), jnp.float32)
    raw = []
    for i in range(NUM_HIDDEN):
        fan_in, fan_out = sizes[i], sizes[i + 1]
        key, kw, kb = jax.random.split(key, 3)
        bound = fan_in ** -0.5
        w = jax.random.uniform(kw, (fan_in, fan_out), jnp.float32, -bound, bound)
        b = jax.random.uniform(kb, (fan_out,), jnp.float32, -bound, bound)
        # Fold BN affine into Linear: W_fold = W*scale, b_fold = b*scale + shift
        if i == 0:
            w0 = w0.at[:fan_in, :fan_out].set(w * scale_val)
        else:
            wh = wh.at[i - 1, :fan_in, :fan_out].set(w * scale_val)
        bh = bh.at[i, 0, :fan_out].set(b * scale_val + shift_val)
        raw.append((w, b))

    fan_in = sizes[-1]
    key, kw, kb = jax.random.split(key, 3)
    bound = fan_in ** -0.5
    w_out = jax.random.uniform(kw, (fan_in, OUTPUT_SIZE), jnp.float32, -bound, bound)
    b_out = jax.random.uniform(kb, (OUTPUT_SIZE,), jnp.float32, -bound, bound)
    wo = jnp.zeros((PAD, OUTPUT_SIZE), jnp.float32).at[:fan_in, :].set(w_out)
    bo = jnp.zeros((1, OUTPUT_SIZE), jnp.float32).at[0, :].set(b_out)

    params_pad = (w0.astype(jnp.bfloat16), wh.astype(jnp.bfloat16), bh,
                  wo.astype(jnp.bfloat16), bo)
    return params_pad, (raw, scale_val, shift_val, w_out, b_out)


def reference(x, raw, scale_val, shift_val, w_out, b_out):
    """Faithful f32 reference (Linear -> BN(scale,shift) -> ReLU)*5 -> Linear -> Softmax."""
    h = x
    for (w, b) in raw:
        h = (h @ w + b) * scale_val + shift_val
        h = jnp.maximum(h, 0.0)
    logits = h @ w_out + b_out
    return jax.nn.softmax(logits, axis=1)


if __name__ == "__main__":
    key = jax.random.PRNGKey(0)
    key, kx, kp = jax.random.split(key, 3)

    batch = 8
    x = jax.random.normal(kx, (batch, INPUT_SIZE), jnp.float32)

    params_pad, params_raw = init_params(kp)

    out = fc_forward(x, *params_pad)
    out = jax.block_until_ready(out)

    ref = reference(x, *params_raw)
    assert out.shape == (batch, OUTPUT_SIZE)
    # bf16 weight/activation quantization -> relaxed tolerance vs. the f32 reference.
    assert jnp.allclose(out, ref, atol=2e-2, rtol=2e-2), (out, ref)
    # Exact-division softmax: rows sum to 1 within float rounding.
    assert jnp.allclose(jnp.sum(out, axis=1), 1.0, atol=1e-4)

    print("KERNEL_OK")
</pallas_src>

<mosaic_0001>
module attributes {stable_mosaic.version = 11 : i64} {
  func.func @mlp_kernel(%arg0: i32, %arg1: memref<8x32xbf16, #tpu.memory_space<vmem>>, %arg2: memref<32x128xbf16, #tpu.memory_space<vmem>>, %arg3: memref<4x128x128xbf16, #tpu.memory_space<vmem>>, %arg4: memref<5x1x128xf32, #tpu.memory_space<vmem>>, %arg5: memref<128x2xbf16, #tpu.memory_space<vmem>>, %arg6: memref<1x2xf32, #tpu.memory_space<vmem>>, %arg7: memref<8x2xf32, #tpu.memory_space<vmem>>) attributes {dimension_semantics = [#tpu.dimension_semantics<parallel>], iteration_bounds = array<i64: 1>, scalar_prefetch = 0 : i64, scratch_operands = 0 : i64, tpu.core_type = #tpu.core_type<tc>, window_params = [{transform_indices = @transform_0, window_bounds = array<i64: 8, 32>}, {pipeline_mode = #tpu.pipeline_mode<synchronous>, transform_indices = @transform_1, window_bounds = array<i64: 32, 128>}, {pipeline_mode = #tpu.pipeline_mode<synchronous>, transform_indices = @transform_2, window_bounds = array<i64: 4, 128, 128>}, {pipeline_mode = #tpu.pipeline_mode<synchronous>, transform_indices = @transform_3, window_bounds = array<i64: 5, 1, 128>}, {pipeline_mode = #tpu.pipeline_mode<synchronous>, transform_indices = @transform_4, window_bounds = array<i64: 128, 2>}, {pipeline_mode = #tpu.pipeline_mode<synchronous>, transform_indices = @transform_5, window_bounds = array<i64: 1, 2>}, {transform_indices = @transform_6, window_bounds = array<i64: 8, 2>}]} {
    %c0 = arith.constant 0 : index
    %c0_0 = arith.constant 0 : index
    %0 = vector.load %arg1[%c0, %c0_0] : memref<8x32xbf16, #tpu.memory_space<vmem>>, vector<8x32xbf16>
    %c0_1 = arith.constant 0 : index
    %c0_2 = arith.constant 0 : index
    %1 = vector.load %arg2[%c0_1, %c0_2] : memref<32x128xbf16, #tpu.memory_space<vmem>>, vector<32x128xbf16>
    %cst = arith.constant dense<0.000000e+00> : vector<8x128xf32>
    %2 = tpu.matmul %0, %1, %cst {dimension_numbers = #tpu.dot_dimension_numbers<[1], [0], [0], [1], [0, 0, 1, 1], [], []>} : vector<8x32xbf16>, vector<32x128xbf16>, vector<8x128xf32> -> vector<8x128xf32>
    %c0_3 = arith.constant 0 : index
    %c0_4 = arith.constant 0 : index
    %c0_5 = arith.constant 0 : index
    %3 = vector.load %arg4[%c0_3, %c0_4, %c0_5] : memref<5x1x128xf32, #tpu.memory_space<vmem>>, vector<1x1x128xf32>
    %4 = vector.shape_cast %3 : vector<1x1x128xf32> to vector<1x128xf32>
    %5 = vector.broadcast %4 : vector<1x128xf32> to vector<8x128xf32>
    %6 = arith.addf %2, %5 : vector<8x128xf32>
    %cst_6 = arith.constant 0.000000e+00 : f32
    %7 = vector.broadcast %cst_6 : f32 to vector<8x128xf32>
    %8 = arith.maximumf %6, %7 : vector<8x128xf32>
    %9 = arith.truncf %8 : vector<8x128xf32> to vector<8x128xbf16>
    %c0_7 = arith.constant 0 : index
    %c0_8 = arith.constant 0 : index
    %c0_9 = arith.constant 0 : index
    %10 = vector.load %arg3[%c0_7, %c0_8, %c0_9] : memref<4x128x128xbf16, #tpu.memory_space<vmem>>, vector<1x128x128xbf16>
    %11 = vector.shape_cast %10 : vector<1x128x128xbf16> to vector<128x128xbf16>
    %cst_10 = arith.constant dense<0.000000e+00> : vector<8x128xf32>
    %12 = tpu.matmul %9, %11, %cst_10 {dimension_numbers = #tpu.dot_dimension_numbers<[1], [0], [0], [1], [0, 0, 1, 1], [], []>} : vector<8x128xbf16>, vector<128x128xbf16>, vector<8x128xf32> -> vector<8x128xf32>
    %c1 = arith.constant 1 : index
    %c0_11 = arith.constant 0 : index
    %c0_12 = arith.constant 0 : index
    %13 = vector.load %arg4[%c1, %c0_11, %c0_12] : memref<5x1x128xf32, #tpu.memory_space<vmem>>, vector<1x1x128xf32>
    %14 = vector.shape_cast %13 : vector<1x1x128xf32> to vector<1x128xf32>
    %15 = vector.broadcast %14 : vector<1x128xf32> to vector<8x128xf32>
    %16 = arith.addf %12, %15 : vector<8x128xf32>
    %cst_13 = arith.constant 0.000000e+00 : f32
    %17 = vector.broadcast %cst_13 : f32 to vector<8x128xf32>
    %18 = arith.maximumf %16, %17 : vector<8x128xf32>
    %19 = arith.truncf %18 : vector<8x128xf32> to vector<8x128xbf16>
    %c1_14 = arith.constant 1 : index
    %c0_15 = arith.constant 0 : index
    %c0_16 = arith.constant 0 : index
    %20 = vector.load %arg3[%c1_14, %c0_15, %c0_16] : memref<4x128x128xbf16, #tpu.memory_space<vmem>>, vector<1x128x128xbf16>
    %21 = vector.shape_cast %20 : vector<1x128x128xbf16> to vector<128x128xbf16>
    %cst_17 = arith.constant dense<0.000000e+00> : vector<8x128xf32>
    %22 = tpu.matmul %19, %21, %cst_17 {dimension_numbers = #tpu.dot_dimension_numbers<[1], [0], [0], [1], [0, 0, 1, 1], [], []>} : vector<8x128xbf16>, vector<128x128xbf16>, vector<8x128xf32> -> vector<8x128xf32>
    %c2 = arith.constant 2 : index
    %c0_18 = arith.constant 0 : index
    %c0_19 = arith.constant 0 : index
    %23 = vector.load %arg4[%c2, %c0_18, %c0_19] : memref<5x1x128xf32, #tpu.memory_space<vmem>>, vector<1x1x128xf32>
    %24 = vector.shape_cast %23 : vector<1x1x128xf32> to vector<1x128xf32>
    %25 = vector.broadcast %24 : vector<1x128xf32> to vector<8x128xf32>
    %26 = arith.addf %22, %25 : vector<8x128xf32>
    %cst_20 = arith.constant 0.000000e+00 : f32
    %27 = vector.broadcast %cst_20 : f32 to vector<8x128xf32>
    %28 = arith.maximumf %26, %27 : vector<8x128xf32>
    %29 = arith.truncf %28 : vector<8x128xf32> to vector<8x128xbf16>
    %c2_21 = arith.constant 2 : index
    %c0_22 = arith.constant 0 : index
    %c0_23 = arith.constant 0 : index
    %30 = vector.load %arg3[%c2_21, %c0_22, %c0_23] : memref<4x128x128xbf16, #tpu.memory_space<vmem>>, vector<1x128x128xbf16>
    %31 = vector.shape_cast %30 : vector<1x128x128xbf16> to vector<128x128xbf16>
    %cst_24 = arith.constant dense<0.000000e+00> : vector<8x128xf32>
    %32 = tpu.matmul %29, %31, %cst_24 {dimension_numbers = #tpu.dot_dimension_numbers<[1], [0], [0], [1], [0, 0, 1, 1], [], []>} : vector<8x128xbf16>, vector<128x128xbf16>, vector<8x128xf32> -> vector<8x128xf32>
    %c3 = arith.constant 3 : index
    %c0_25 = arith.constant 0 : index
    %c0_26 = arith.constant 0 : index
    %33 = vector.load %arg4[%c3, %c0_25, %c0_26] : memref<5x1x128xf32, #tpu.memory_space<vmem>>, vector<1x1x128xf32>
    %34 = vector.shape_cast %33 : vector<1x1x128xf32> to vector<1x128xf32>
    %35 = vector.broadcast %34 : vector<1x128xf32> to vector<8x128xf32>
    %36 = arith.addf %32, %35 : vector<8x128xf32>
    %cst_27 = arith.constant 0.000000e+00 : f32
    %37 = vector.broadcast %cst_27 : f32 to vector<8x128xf32>
    %38 = arith.maximumf %36, %37 : vector<8x128xf32>
    %39 = arith.truncf %38 : vector<8x128xf32> to vector<8x128xbf16>
    %c3_28 = arith.constant 3 : index
    %c0_29 = arith.constant 0 : index
    %c0_30 = arith.constant 0 : index
    %40 = vector.load %arg3[%c3_28, %c0_29, %c0_30] : memref<4x128x128xbf16, #tpu.memory_space<vmem>>, vector<1x128x128xbf16>
    %41 = vector.shape_cast %40 : vector<1x128x128xbf16> to vector<128x128xbf16>
    %cst_31 = arith.constant dense<0.000000e+00> : vector<8x128xf32>
    %42 = tpu.matmul %39, %41, %cst_31 {dimension_numbers = #tpu.dot_dimension_numbers<[1], [0], [0], [1], [0, 0, 1, 1], [], []>} : vector<8x128xbf16>, vector<128x128xbf16>, vector<8x128xf32> -> vector<8x128xf32>
    %c4 = arith.constant 4 : index
    %c0_32 = arith.constant 0 : index
    %c0_33 = arith.constant 0 : index
    %43 = vector.load %arg4[%c4, %c0_32, %c0_33] : memref<5x1x128xf32, #tpu.memory_space<vmem>>, vector<1x1x128xf32>
    %44 = vector.shape_cast %43 : vector<1x1x128xf32> to vector<1x128xf32>
    %45 = vector.broadcast %44 : vector<1x128xf32> to vector<8x128xf32>
    %46 = arith.addf %42, %45 : vector<8x128xf32>
    %cst_34 = arith.constant 0.000000e+00 : f32
    %47 = vector.broadcast %cst_34 : f32 to vector<8x128xf32>
    %48 = arith.maximumf %46, %47 : vector<8x128xf32>
    %49 = arith.truncf %48 : vector<8x128xf32> to vector<8x128xbf16>
    %c0_35 = arith.constant 0 : index
    %c0_36 = arith.constant 0 : index
    %50 = vector.load %arg5[%c0_35, %c0_36] : memref<128x2xbf16, #tpu.memory_space<vmem>>, vector<128x2xbf16>
    %cst_37 = arith.constant dense<0.000000e+00> : vector<8x2xf32>
    %51 = tpu.matmul %49, %50, %cst_37 {dimension_numbers = #tpu.dot_dimension_numbers<[1], [0], [0], [1], [0, 0, 1, 1], [], []>} : vector<8x128xbf16>, vector<128x2xbf16>, vector<8x2xf32> -> vector<8x2xf32>
    %c0_38 = arith.constant 0 : index
    %c0_39 = arith.constant 0 : index
    %52 = vector.load %arg6[%c0_38, %c0_39] : memref<1x2xf32, #tpu.memory_space<vmem>>, vector<1x2xf32>
    %53 = vector.broadcast %52 : vector<1x2xf32> to vector<8x2xf32>
    %54 = arith.addf %51, %53 : vector<8x2xf32>
    %cst_40 = arith.constant dense<0xFF800000> : vector<8xf32>
    %55 = vector.multi_reduction <maximumf>, %54, %cst_40 [1] : vector<8x2xf32> to vector<8xf32>
    %56 = vector.shape_cast %55 : vector<8xf32> to vector<8x1xf32>
    %57 = vector.broadcast %56 : vector<8x1xf32> to vector<8x2xf32>
    %58 = arith.subf %54, %57 : vector<8x2xf32>
    %59 = math.exp %58 : vector<8x2xf32>
    %cst_41 = arith.constant dense<0.000000e+00> : vector<8xf32>
    %60 = vector.multi_reduction <add>, %59, %cst_41 [1] : vector<8x2xf32> to vector<8xf32>
    %61 = vector.shape_cast %60 : vector<8xf32> to vector<8x1xf32>
    %62 = vector.broadcast %61 : vector<8x1xf32> to vector<8x2xf32>
    %63 = arith.divf %59, %62 : vector<8x2xf32>
    %c0_42 = arith.constant 0 : index
    %c0_43 = arith.constant 0 : index
    %64 = vector.load %arg7[%c0_42, %c0_43] : memref<8x2xf32, #tpu.memory_space<vmem>>, vector<8x2xf32>
    tpu.vector_store %arg7[%c0_42, %c0_43], %63 {strides = array<i32>} : memref<8x2xf32, #tpu.memory_space<vmem>>, vector<8x2xf32>,
    return
  }
  func.func @transform_0(%arg0: i32) -> (i32, i32) {
    %c0_i32 = arith.constant 0 : i32
    %c0_i32_0 = arith.constant 0 : i32
    return %arg0, %c0_i32 : i32, i32
  }
  func.func @transform_1(%arg0: i32) -> (i32, i32) {
    %c0_i32 = arith.constant 0 : i32
    %c0_i32_0 = arith.constant 0 : i32
    %c0_i32_1 = arith.constant 0 : i32
    return %c0_i32, %c0_i32_0 : i32, i32
  }
  func.func @transform_2(%arg0: i32) -> (i32, i32, i32) {
    %c0_i32 = arith.constant 0 : i32
    %c0_i32_0 = arith.constant 0 : i32
    %c0_i32_1 = arith.constant 0 : i32
    %c0_i32_2 = arith.constant 0 : i32
    return %c0_i32, %c0_i32_0, %c0_i32_1 : i32, i32, i32
  }
  func.func @transform_3(%arg0: i32) -> (i32, i32, i32) {
    %c0_i32 = arith.constant 0 : i32
    %c0_i32_0 = arith.constant 0 : i32
    %c0_i32_1 = arith.constant 0 : i32
    %c0_i32_2 = arith.constant 0 : i32
    return %c0_i32, %c0_i32_0, %c0_i32_1 : i32, i32, i32
  }
  func.func @transform_4(%arg0: i32) -> (i32, i32) {
    %c0_i32 = arith.constant 0 : i32
    %c0_i32_0 = arith.constant 0 : i32
    %c0_i32_1 = arith.constant 0 : i32
    return %c0_i32, %c0_i32_0 : i32, i32
  }
  func.func @transform_5(%arg0: i32) -> (i32, i32) {
    %c0_i32 = arith.constant 0 : i32
    %c0_i32_0 = arith.constant 0 : i32
    %c0_i32_1 = arith.constant 0 : i32
    return %c0_i32, %c0_i32_0 : i32, i32
  }
  func.func @transform_6(%arg0: i32) -> (i32, i32) {
    %c0_i32 = arith.constant 0 : i32
    %c0_i32_0 = arith.constant 0 : i32
    return %arg0, %c0_i32 : i32, i32
  }
}

</mosaic_0001>

<bundles_post_ra>
// kernel: run_mlp.1
= control target key start
LH: loop header
LB: loop body
LE: loop exit
PB: predicated region body
PF: predicated region fallthrough
CT: control target
= control target key end

     0   :  { %11 = vsyncpa [#allocation3], 0  ;;  %s980_s21 = smov [#allocation2]   ;;  %s1143_s0 = inlined_call_operand.vmem [shape: bf16[8,32], index: 0, kind: input, shape index: {}]   ;;  %s1144_s1 = inlined_call_operand.vmem [shape: bf16[32,128], index: 1, kind: input, shape index: {}]   ;;  %s1145_s2 = inlined_call_operand.hbm [shape: bf16[4,128,128], index: 2, kind: input, shape index: {}]   ;;  %s1146_s3 = inlined_call_operand.vmem [shape: f32[5,1,128], index: 3, kind: input, shape index: {}]   ;;  %s1147_s4 = inlined_call_operand.vmem [shape: bf16[128,2], index: 4, kind: input, shape index: {}]   ;;  %s1148_s5 = inlined_call_operand.vmem [shape: f32[1,2], index: 5, kind: input, shape index: {}]   ;;  %s1149_s6 = inlined_call_operand.vmem [shape: f32[8,2], index: 6, kind: output, shape index: {}]  }
   0x1   :  { %s21_s22 = sshll.u32 %s980_s21, 4  ;;  %s956_s25 = scalar_lea.hbm %s1145_s2, 4096  ;;  %s22_s22 = int_to_ptr.vmem [resolvable:$true] %s21_s22 }
   0x2   :  { %p957_p0 = scmp.ne.s32.totalorder %s1145_s2, %s956_s25  ;;  %p960_p1 = scmp.lt.u32.totalorder %s956_s25, %s1145_s2 }
   0x4   :  { %p962_p2 = pnand %p960_p1, %p957_p0 }
   0x6   :  { %965 = shalt.err (!%p962_p2)
}
   0x7   :  { %s966_s30 = scalar_lea.vmem %s22_s22, 4096  ;;  %p971_p4 = scmp.lt.s32.totalorder %s22_s22, %s22_s22 }
   0x8   :  { %p967_p3 = scmp.ne.s32.totalorder %s22_s22, %s966_s30  ;;  %p972_p5 = scmp.lt.s32.totalorder %s966_s30, %s966_s30 }
   0xa   :  { %p973_p6 = por %p972_p5, %p971_p4 }
   0xc   :  { %p974_p7 = pnand %p973_p6, %p967_p3 }
   0xe   :  { %977 = shalt.err (!%p974_p7)
}
   0xf   :  { %s981_s7 = smov 64   ;;  %s982_s8 = smov 4  }
  0x10   :  { %27 = dma.hbm_to_vmem [thread:$0]  %s1145_s2, 4096, %s22_s22, [#allocation3], %s981_s7, %s981_s7, %s982_s8  }
  0x11   :  { %978 = dma.done.wait [#allocation3], 4096  }
  0x12   :  { %979 = vsyncadd [#allocation3], 4294963200  ;;  %v983_v0 = vmov 0.0   ;;  %vm984_vm0 = vmmov 0   ;;  %v910_v1 = vld [vmem:[%s1144_s1] sm:$0xff]   ;;  %v911_v2 = vld [vmem:[%s1144_s1 + $0x8] sm:$0xff]  }
  0x13   :  { %797 = vmatprep.subr.bf16.mxu0 %v983_v0  ;;  %801 = vmatprep.mubr.msk.bf16.mxu0 %vm984_vm0, %v983_v0  ;;  %v912_v3 = vld [vmem:[#allocation2] sm:$0xff]   ;;  %vm62_vm1 = vcmask 261120   ;;  %v913_v4 = vld [vmem:[#allocation2 + $0x8] sm:$0xff]   ;;  %v914_v6 = vld [vmem:[#allocation2 + $0x10] sm:$0xff]   ;;  %vm678_vm2 = vcmask 15360  }
  0x14   :  { %805 = vmatprep.subr.bf16.mxu1 %v983_v0  ;;  %821 = vmatprep.mubr.msk.bf16.mxu1 %vm984_vm0, %v983_v0  ;;  %v38_v5 = vld [vmem:[%s1143_s0] sm:$0xf]  ;;  %v915_v7 = vld [vmem:[#allocation2 + $0x18] sm:$0xff]   ;;  %v917_v9 = vld [vmem:[#allocation2 + $0x28] sm:$0xff]  }
  0x15   :  { %798 = vmatpush3.bf16.msra.mxu0 %v910_v1  ;;  %806 = vmatpush3.bf16.msra.mxu1 %v912_v3  ;;  %v916_v8 = vld [vmem:[#allocation2 + $0x20] sm:$0xff]   ;;  %v918_v10 = vld [vmem:[#allocation2 + $0x30] sm:$0xff]   ;;  %v919_v11 = vld [vmem:[#allocation2 + $0x38] sm:$0xff]  }
  0x16   :  { %799 = vmatprep.subr.bf16.mxu0 %v983_v0  ;;  %807 = vmatprep.subr.bf16.mxu1 %v983_v0  ;;  %v920_v12 = vld [vmem:[#allocation2 + $0x40] sm:$0xff]   ;;  %v921_v13 = vld [vmem:[#allocation2 + $0x48] sm:$0xff]   ;;  %v922_v14 = vld [vmem:[#allocation2 + $0x50] sm:$0xff]  }
  0x17   :  { %v923_v15 = vld [vmem:[#allocation2 + $0x58] sm:$0xff]   ;;  %v924_v16 = vld [vmem:[#allocation2 + $0x60] sm:$0xff]   ;;  %v925_v17 = vld [vmem:[#allocation2 + $0x68] sm:$0xff]  }
  0x18   :  { %v696_v18 = vld [vmem:[%s1146_s3] ss:$0 sm:$0xff]  ;;  %v926_v26 = vld [vmem:[#allocation2 + $0x70] sm:$0xff]   ;;  %v927_v27 = vld [vmem:[#allocation2 + $0x78] sm:$0xff]  }
  0x19   :  { %800 = vmatpush3.bf16.msra.mxu0 %v911_v2  ;;  %808 = vmatpush3.bf16.msra.mxu1 %v913_v4  ;;  %v928_v28 = vld [vmem:[#allocation2 + $0x80] sm:$0xff]   ;;  %v929_v29 = vld [vmem:[#allocation2 + $0x88] sm:$0xff]   ;;  %v930_v30 = vld [vmem:[#allocation2 + $0x90] sm:$0xff]  }
  0x1a   :  { %825 = vmatprep.subr.bf16.mxu0 %v983_v0  ;;  %809 = vmatprep.subr.bf16.mxu1 %v983_v0  ;;  %v931_v31 = vld [vmem:[#allocation2 + $0x98] sm:$0xff]   ;;  %v932_v32 = vld [vmem:[#allocation2 + $0xa0] sm:$0xff]   ;;  %v933_v33 = vld [vmem:[#allocation2 + $0xa8] sm:$0xff]  }
  0x1b   :  { %v701_v34 = vld [vmem:[%s1146_s3 + $0x1] ss:$0 sm:$0xff]  ;;  %v934_v42 = vld [vmem:[#allocation2 + $0xb0] sm:$0xff]   ;;  %v935_v43 = vld [vmem:[#allocation2 + $0xb8] sm:$0xff]  }
  0x1c   :  { %802 = vmatmul.mubr.msk.bf16.vlgmr.msra.gmra.mrb[0].mxu0 %vm62_vm1, %v38_v5  ;;  %v936_v44 = vld [vmem:[#allocation2 + $0xc0] sm:$0xff]   ;;  %v937_v45 = vld [vmem:[#allocation2 + $0xc8] sm:$0xff]   ;;  %v938_v46 = vld [vmem:[#allocation2 + $0xd0] sm:$0xff]  }
  0x1d   :  { %841 = vmatprep.mubr.msk.bf16.mxu0 %vm984_vm0, %v983_v0  ;;  %810 = vmatpush3.bf16.msra.mxu1 %v914_v6  ;;  %v939_v47 = vld [vmem:[#allocation2 + $0xd8] sm:$0xff]   ;;  %v940_v48 = vld [vmem:[#allocation2 + $0xe0] sm:$0xff]   ;;  %v941_v49 = vld [vmem:[#allocation2 + $0xe8] sm:$0xff]  }
  0x1e   :  { %811 = vmatprep.subr.bf16.mxu1 %v983_v0  ;;  %826 = vmatpush3.bf16.msra.mxu0 %v920_v12  ;;  %v711_v50 = vld [vmem:[%s1146_s3 + $0x2] ss:$0 sm:$0xff]  ;;  %v942_v58 = vld [vmem:[#allocation2 + $0xf0] sm:$0xff]   ;;  %v943_v59 = vld [vmem:[#allocation2 + $0xf8] sm:$0xff]  }
  0x1f   :  { %827 = vmatprep.subr.bf16.mxu0 %v983_v0  ;;  %v944_v60 = vld [vmem:[%s1147_s4] sm:$0xff]   ;;  %v945_v61 = vld [vmem:[%s1147_s4 + $0x8] sm:$0xff]   ;;  %v946_v62 = vld [vmem:[%s1147_s4 + $0x10] sm:$0xff]  }
  0x20   :  { %v947_v63 = vld [vmem:[%s1147_s4 + $0x18] sm:$0xff]   ;;  %v948_v1 = vld [vmem:[%s1147_s4 + $0x20] sm:$0xff]   ;;  %v949_v2 = vld [vmem:[%s1147_s4 + $0x28] sm:$0xff]  }
  0x21   :  { %812 = vmatpush3.bf16.msra.mxu1 %v915_v7  ;;  %v721_v3 = vld [vmem:[%s1146_s3 + $0x3] ss:$0 sm:$0xff]  ;;  %v951_v12 = vld [vmem:[%s1147_s4 + $0x38] sm:$0xff]  }
  0x22   :  { %813 = vmatprep.subr.bf16.mxu1 %v983_v0  ;;  %828 = vmatpush3.bf16.msra.mxu0 %v921_v13  ;;  %v731_v13 = vld [vmem:[%s1146_s3 + $0x4] ss:$0 sm:$0xff] }
  0x23   :  { %829 = vmatprep.subr.bf16.mxu0 %v983_v0 }
  0x25   :  { %814 = vmatpush3.bf16.msra.mxu1 %v916_v8 }
  0x26   :  { %815 = vmatprep.subr.bf16.mxu1 %v983_v0  ;;  %830 = vmatpush3.bf16.msra.mxu0 %v922_v14 }
  0x27   :  { %831 = vmatprep.subr.bf16.mxu0 %v983_v0 }
  0x29   :  { %816 = vmatpush3.bf16.msra.mxu1 %v917_v9 }
  0x2a   :  { %817 = vmatprep.subr.bf16.mxu1 %v983_v0  ;;  %832 = vmatpush3.bf16.msra.mxu0 %v923_v15 }
  0x2b   :  { %833 = vmatprep.subr.bf16.mxu0 %v983_v0 }
  0x2d   :  { %818 = vmatpush3.bf16.msra.mxu1 %v918_v10 }
  0x2e   :  { %819 = vmatprep.subr.bf16.mxu1 %v983_v0  ;;  %834 = vmatpush3.bf16.msra.mxu0 %v924_v16 }
  0x2f   :  { %835 = vmatprep.subr.bf16.mxu0 %v983_v0 }
  0x31   :  { %820 = vmatpush3.bf16.msra.mxu1 %v919_v11  ;;  %v950_v11 = vld [vmem:[%s1147_s4 + $0x30] sm:$0xff]  }
  0x32   :  { %845 = vmatprep.subr.bf16.mxu1 %v983_v0  ;;  %836 = vmatpush3.bf16.msra.mxu0 %v925_v17 }
  0x33   :  { %837 = vmatprep.subr.bf16.mxu0 %v983_v0 }
  0x36   :  { %838 = vmatpush3.bf16.msra.mxu0 %v926_v26 }
  0x37   :  { %839 = vmatprep.subr.bf16.mxu0 %v983_v0 }
  0x3a   :  { %840 = vmatpush3.bf16.msra.mxu0 %v927_v27 }
  0x3b   :  { %865 = vmatprep.subr.bf16.mxu0 %v983_v0 }
  0xef   :  { %v100_v19 = vpop.f32.mrb[0].mxu0 }
  0xf0   :  { %v101_v20 = vadd.f32 %v696_v18, %v100_v19  ;;  %v803_v21 = vpop.f32.mrb[1].mxu0 }
  0xf1   :  { %v103_v22 = vpop.f32.mrb[2].mxu0 }
  0xf2   :  { %v106_v23 = vmax.f32 %v101_v20, 0.0  ;;  %v804_v24 = vpop.f32.mrb[3].mxu0 }
  0xf4   :  { %v107_v25 = vpack.c.bf16 %v106_v23, %v106_v23 }
  0xf6   :  { %822 = vmatmul.mubr.bf16.vlgmr.msra.gmra.mrb[0].mxu1 %v107_v25 }
  0xf7   :  { %861 = vmatprep.mubr.msk.bf16.mxu1 %vm984_vm0, %v983_v0  ;;  %846 = vmatpush3.bf16.msra.mxu1 %v928_v28 }
  0xf8   :  { %847 = vmatprep.subr.bf16.mxu1 %v983_v0 }
  0xfb   :  { %848 = vmatpush3.bf16.msra.mxu1 %v929_v29 }
  0xfc   :  { %849 = vmatprep.subr.bf16.mxu1 %v983_v0 }
  0xff   :  { %850 = vmatpush3.bf16.msra.mxu1 %v930_v30 }
 0x100   :  { %851 = vmatprep.subr.bf16.mxu1 %v983_v0 }
 0x103   :  { %852 = vmatpush3.bf16.msra.mxu1 %v931_v31 }
 0x104   :  { %853 = vmatprep.subr.bf16.mxu1 %v983_v0 }
 0x107   :  { %854 = vmatpush3.bf16.msra.mxu1 %v932_v32 }
 0x108   :  { %855 = vmatprep.subr.bf16.mxu1 %v983_v0 }
 0x10b   :  { %856 = vmatpush3.bf16.msra.mxu1 %v933_v33 }
 0x10c   :  { %857 = vmatprep.subr.bf16.mxu1 %v983_v0 }
 0x10f   :  { %858 = vmatpush3.bf16.msra.mxu1 %v934_v42 }
 0x110   :  { %859 = vmatprep.subr.bf16.mxu1 %v983_v0 }
 0x113   :  { %860 = vmatpush3.bf16.msra.mxu1 %v935_v43 }
 0x114   :  { %885 = vmatprep.subr.bf16.mxu1 %v983_v0 }
 0x1c9   :  { %v214_v35 = vpop.f32.mrb[0].mxu1 }
 0x1ca   :  { %v215_v36 = vadd.f32 %v701_v34, %v214_v35  ;;  %v823_v37 = vpop.f32.mrb[1].mxu1 }
 0x1cb   :  { %v217_v38 = vpop.f32.mrb[2].mxu1 }
 0x1cc   :  { %v220_v39 = vmax.f32 %v215_v36, 0.0  ;;  %v824_v40 = vpop.f32.mrb[3].mxu1 }
 0x1ce   :  { %v221_v41 = vpack.c.bf16 %v220_v39, %v220_v39 }
 0x1d0   :  { %842 = vmatmul.mubr.bf16.vlgmr.msra.gmra.mrb[4].mxu0 %v221_v41 }
 0x1d1   :  { %881 = vmatprep.mubr.msk.bf16.mxu0 %vm984_vm0, %v983_v0  ;;  %866 = vmatpush3.bf16.msra.mxu0 %v936_v44 }
 0x1d2   :  { %867 = vmatprep.subr.bf16.mxu0 %v983_v0 }
 0x1d5   :  { %868 = vmatpush3.bf16.msra.mxu0 %v937_v45 }
 0x1d6   :  { %869 = vmatprep.subr.bf16.mxu0 %v983_v0 }
 0x1d9   :  { %870 = vmatpush3.bf16.msra.mxu0 %v938_v46 }
 0x1da   :  { %871 = vmatprep.subr.bf16.mxu0 %v983_v0 }
 0x1dd   :  { %872 = vmatpush3.bf16.msra.mxu0 %v939_v47 }
 0x1de   :  { %873 = vmatprep.subr.bf16.mxu0 %v983_v0 }
 0x1e1   :  { %874 = vmatpush3.bf16.msra.mxu0 %v940_v48 }
 0x1e2   :  { %875 = vmatprep.subr.bf16.mxu0 %v983_v0 }
 0x1e5   :  { %876 = vmatpush3.bf16.msra.mxu0 %v941_v49 }
 0x1e6   :  { %877 = vmatprep.subr.bf16.mxu0 %v983_v0 }
 0x1e9   :  { %878 = vmatpush3.bf16.msra.mxu0 %v942_v58 }
 0x1ea   :  { %879 = vmatprep.subr.bf16.mxu0 %v983_v0 }
 0x1ed   :  { %880 = vmatpush3.bf16.msra.mxu0 %v943_v59 }
 0x2a3   :  { %v329_v51 = vpop.f32.mrb[4].mxu0 }
 0x2a4   :  { %v330_v52 = vadd.f32 %v711_v50, %v329_v51  ;;  %v843_v53 = vpop.f32.mrb[5].mxu0 }
 0x2a5   :  { %v332_v54 = vpop.f32.mrb[6].mxu0 }
 0x2a6   :  { %v335_v55 = vmax.f32 %v330_v52, 0.0  ;;  %v844_v56 = vpop.f32.mrb[7].mxu0 }
 0x2a8   :  { %v336_v57 = vpack.c.bf16 %v335_v55, %v335_v55 }
 0x2aa   :  { %862 = vmatmul.mubr.bf16.vlgmr.msra.gmra.mrb[4].mxu1 %v336_v57 }
 0x2ab   :  { %901 = vmatprep.mubr.msk.bf16.mxu1 %vm984_vm0, %v983_v0  ;;  %886 = vmatpush3.bf16.msra.mxu1 %v944_v60 }
 0x2ac   :  { %887 = vmatprep.subr.bf16.mxu1 %v983_v0 }
 0x2af   :  { %888 = vmatpush3.bf16.msra.mxu1 %v945_v61 }
 0x2b0   :  { %889 = vmatprep.subr.bf16.mxu1 %v983_v0 }
 0x2b3   :  { %890 = vmatpush3.bf16.msra.mxu1 %v946_v62 }
 0x2b4   :  { %891 = vmatprep.subr.bf16.mxu1 %v983_v0 }
 0x2b7   :  { %892 = vmatpush3.bf16.msra.mxu1 %v947_v63 }
 0x2b8   :  { %893 = vmatprep.subr.bf16.mxu1 %v983_v0 }
 0x2bb   :  { %894 = vmatpush3.bf16.msra.mxu1 %v948_v1 }
 0x2bc   :  { %895 = vmatprep.subr.bf16.mxu1 %v983_v0 }
 0x2bf   :  { %896 = vmatpush3.bf16.msra.mxu1 %v949_v2 }
 0x2c0   :  { %897 = vmatprep.subr.bf16.mxu1 %v983_v0 }
 0x2c3   :  { %898 = vmatpush3.bf16.msra.mxu1 %v950_v11 }
 0x2c4   :  { %899 = vmatprep.subr.bf16.mxu1 %v983_v0  ;;  %v740_v0 = vld [vmem:[%s1148_s5] ss:$0 sm:$0xff] }
 0x2c7   :  { %900 = vmatpush3.bf16.msra.mxu1 %v951_v12 }
 0x37d   :  { %v444_v4 = vpop.f32.mrb[4].mxu1 }
 0x37e   :  { %v445_v5 = vadd.f32 %v721_v3, %v444_v4  ;;  %v863_v6 = vpop.f32.mrb[5].mxu1 }
 0x37f   :  { %v447_v7 = vpop.f32.mrb[6].mxu1 }
 0x380   :  { %v450_v8 = vmax.f32 %v445_v5, 0.0  ;;  %v864_v9 = vpop.f32.mrb[7].mxu1 }
 0x382   :  { %v451_v10 = vpack.c.bf16 %v450_v8, %v450_v8 }
 0x384   :  { %882 = vmatmul.mubr.bf16.vlgmr.msra.gmra.mrb[8].mxu0 %v451_v10 }
 0x457   :  { %v559_v14 = vpop.f32.mrb[8].mxu0 }
 0x458   :  { %v560_v15 = vadd.f32 %v731_v13, %v559_v14  ;;  %v883_v16 = vpop.f32.mrb[9].mxu0 }
 0x459   :  { %v562_v17 = vpop.f32.mrb[10].mxu0 }
 0x45a   :  { %v565_v18 = vmax.f32 %v560_v15, 0.0  ;;  %v884_v19 = vpop.f32.mrb[11].mxu0 }
 0x45c   :  { %v566_v20 = vpack.c.bf16 %v565_v18, %v565_v18 }
 0x45e   :  { %902 = vmatmul.mubr.bf16.vlgmr.msra.gmra.mrb[8].mxu1 %v566_v20 }
 0x531   :  { %v672_v21 = vpop.f32.mrb[8].mxu1 }
 0x532   :  { %v673_v22 = vadd.f32 %v740_v0, %v672_v21  ;;  %v903_v23 = vpop.f32.mrb[9].mxu1 }
 0x533   :  { %v675_v24 = vpop.f32.mrb[10].mxu1 }
 0x534   :  { %v904_v25 = vpop.f32.mrb[11].mxu1  ;;  %v679_v26 = vsel %vm678_vm2, %v673_v22, -inf }
 0x535   :  { %680 = vmax.xlane.f32.xlu0 %v679_v26 }
 0x5c2   :  { %v681_v27 = vpop.xlane.xlu0 %680 }
 0x5c3   :  { %v682_v28 = vsub.f32 %v673_v22, %v681_v27 }
 0x5c5   :  { %v683_v29 = vmul.f32 1.442695, %v682_v28 }
 0x5c7   :  { %952 = vpow2.f32 %v683_v29 }
 0x5d1   :  { %v953_v30 = vpop.eup %952 }
 0x5d2   :  { %v685_v31 = vsel %vm678_vm2, %v953_v30, 0.0 }
 0x5d3   :  { %686 = vadd.xlane.f32.xlu0 %v685_v31 }
 0x660   :  { %v687_v32 = vpop.xlane.xlu0 %686 }
 0x661   :  { %954 = vrcp.f32 %v687_v32 }
 0x66b   :  { %v955_v33 = vpop.eup %954 }
 0x66c   :  { %v689_v34 = vmul.f32 %v955_v33, %v953_v30 }
 0x66e   :  { %690 = vst.msk [vmem:[%s1149_s6] sm:$0xff] %vm678_vm2, %v689_v34 }
 0x66f   :  { %695 = vsyncpa [#allocation3], 1 }

</bundles_post_ra>
